<compile_context>
chip_gen: v5e
topology: v5e:2x2
jax: 0.10.0
libtpu: 0.0.40
codegen_flags: <defaults>
</compile_context>

<pallas_src>
import functools

import jax
import jax.numpy as jnp
import numpy as np
from jax.experimental import pallas as pl
from jax.experimental.pallas import tpu as pltpu


# ----------------------------- kernels ------------------------------------


def _se_flat_kernel(x_ref, poolm_ref, expandm_ref, w1t_ref, w2t_ref, o_ref, *, inv_hw):
    """Lane-dense path: x block is (Bt, C*HW); pool/expand via MXU matmuls."""
    xv = x_ref[...]                                              # (Bt, CHW), native dtype
    # Squeeze: (Bt, CHW) @ (CHW, C) 0/1 matrix, f32 accumulation on the MXU.
    pooled = jnp.dot(xv, poolm_ref[...],
                     preferred_element_type=jnp.float32) * inv_hw    # (Bt, C)
    # Excitation, row-form (amortized over the Bt images of this block).
    h = jnp.dot(pooled, w1t_ref[...].astype(jnp.float32),
                preferred_element_type=jnp.float32)              # (Bt, R)
    h = h * jax.nn.sigmoid(h)                                    # SiLU
    s = jax.nn.sigmoid(jnp.dot(h, w2t_ref[...].astype(jnp.float32),
                               preferred_element_type=jnp.float32))  # (Bt, C)
    # Expand the per-channel gate lane-densely: (Bt, C) @ (C, CHW) 0/1 matrix.
    gate = jnp.dot(s.astype(xv.dtype), expandm_ref[...],
                   preferred_element_type=xv.dtype)              # (Bt, CHW)
    o_ref[...] = (xv * gate).astype(o_ref.dtype)


def _se_3d_kernel(x_ref, w1t_ref, w2t_ref, o_ref, *, inv_hw):
    """General path: x block is (Bt, C, HW); pool via f32 cross-lane reduce."""
    xv = x_ref[...]                                              # (Bt, C, HW)
    pooled = jnp.sum(xv, axis=2, dtype=jnp.float32) * inv_hw     # (Bt, C) f32
    h = jnp.dot(pooled, w1t_ref[...].astype(jnp.float32),
                preferred_element_type=jnp.float32)              # (Bt, R)
    h = h * jax.nn.sigmoid(h)
    s = jax.nn.sigmoid(jnp.dot(h, w2t_ref[...].astype(jnp.float32),
                               preferred_element_type=jnp.float32))  # (Bt, C)
    # Scale in the input dtype (no full-tile up/down cast for bf16 inputs).
    o_ref[...] = (xv * s[:, :, None].astype(xv.dtype)).astype(o_ref.dtype)


def _se_pool_kernel(x_ref, pooled_ref, *, hw_total, hw_tile, needs_mask):
    """Two-pass fallback, pass 1: accumulate per-channel sums over HW tiles."""
    h = pl.program_id(1)

    @pl.when(h == 0)
    def _():
        pooled_ref[...] = jnp.zeros_like(pooled_ref)

    xv = x_ref[...]                                              # (1, C, hw_tile)
    if needs_mask:
        pos = h * hw_tile + jax.lax.broadcasted_iota(jnp.int32, xv.shape, 2)
        xv = jnp.where(pos < hw_total, xv, jnp.zeros_like(xv))
    pooled_ref[0] += jnp.sum(xv, axis=2, dtype=jnp.float32)      # (1, C)

    @pl.when(h == pl.num_programs(1) - 1)
    def _():
        pooled_ref[...] = pooled_ref[...] * (1.0 / hw_total)


def _se_scale_kernel(x_ref, pooled_ref, w1t_ref, w2t_ref, o_ref):
    """Two-pass fallback, pass 2: recompute the tiny gate FCs and rescale."""
    pooled = pooled_ref[0]                                       # (1, C) f32 mean
    h = jnp.dot(pooled, w1t_ref[...].astype(jnp.float32),
                preferred_element_type=jnp.float32)
    h = h * jax.nn.sigmoid(h)
    s = jax.nn.sigmoid(jnp.dot(h, w2t_ref[...].astype(jnp.float32),
                               preferred_element_type=jnp.float32))  # (1, C)
    xv = x_ref[...]                                              # (1, C, hw_tile)
    o_ref[...] = (xv * s[:, :, None].astype(xv.dtype)).astype(o_ref.dtype)


# ----------------------------- wrapper -------------------------------------

_TARGET_BLOCK_BYTES = 4 << 20     # 2-8 MiB per-block pipelining sweet spot
_FLAT_MATRIX_CAP = 2 << 20        # max resident pool+expand matrix footprint


def _vmem_cap_bytes():
    """~80% of the physical VMEM of the local TPU generation (fallback: v7x)."""
    cap = None
    try:
        cap = int(pltpu.get_tpu_info().vmem_capacity_bytes)
    except Exception:
        cap = None
    if not cap or cap <= 0:
        cap = 64 << 20            # v7x has the smallest physical VMEM (64 MiB)
    return max(16 << 20, int(cap * 0.8))


def se_block(x_nchw, w1, w2, *,
             target_block_bytes=_TARGET_BLOCK_BYTES,
             force_two_pass=False):
    """SEBlock forward.  x_nchw: (B,C,H,W); w1: (R,C); w2: (C,R) (nn.Linear)."""
    B, C, H, W = x_nchw.shape
    R = w1.shape[0]
    HW = H * W
    dtype = x_nchw.dtype
    elt = jnp.dtype(dtype).itemsize
    sublane = max(8, 32 // elt)                  # f32: 8, bf16: 16, int8: 32

    # Row-form weights (free at trace time): h = pooled @ w1t, s = silu(h) @ w2t.
    w1t = jnp.transpose(w1)                      # (C, R)
    w2t = jnp.transpose(w2)                      # (R, C)
    weight_bytes = (w1.size + w2.size) * jnp.dtype(w1.dtype).itemsize

    vmem_cap = _vmem_cap_bytes()
    usable = max(8 << 20, vmem_cap - 2 * weight_bytes - (4 << 20))
    budget = max(1, min(target_block_bytes, usable // 4))   # x4 for dbl-buffered in+out
    inv_hw = 1.0 / HW

    # ---------- Path 1: lane-dense flattened (B, C*HW) blocks --------------
    flat_matrix_bytes = 2 * (C * HW) * C * elt
    prefer_flat = (HW % 128 != 0) or (C < sublane)
    if prefer_flat and flat_matrix_bytes <= _FLAT_MATRIX_CAP and not force_two_pass:
        CHW = C * HW
        x = x_nchw.reshape(B, CHW)               # free view of the NCHW buffer
        row_bytes = CHW * elt
        rows = max(1, budget // row_bytes)
        Bt = B if rows >= B else max(8, (rows // 8) * 8)   # sublane-tile friendly
        nb = pl.cdiv(B, Bt)
        block_bytes = Bt * row_bytes

        # Constant 0/1 pool / gate-expansion matrices in the input dtype (exact),
        # so the big matmuls run without up-casting the x tile.
        eye = jnp.eye(C, dtype=dtype)
        poolm = jnp.repeat(eye, HW, axis=0)      # (CHW, C): poolm[c*HW+i, c] = 1
        expandm = jnp.repeat(eye, HW, axis=1)    # (C, CHW): expandm[c, c*HW+i] = 1

        vmem_limit = int(min(vmem_cap,
                             max(16 << 20,
                                 4 * block_bytes + 2 * flat_matrix_bytes
                                 + 2 * weight_bytes + (4 << 20))))

        out = pl.pallas_call(
            functools.partial(_se_flat_kernel, inv_hw=inv_hw),
            out_shape=jax.ShapeDtypeStruct((B, CHW), dtype),
            grid_spec=pltpu.PrefetchScalarGridSpec(
                num_scalar_prefetch=0,
                grid=(nb,),
                in_specs=[
                    pl.BlockSpec((Bt, CHW), lambda b: (b, 0)),
                    pl.BlockSpec((CHW, C), lambda b: (0, 0)),    # resident
                    pl.BlockSpec((C, CHW), lambda b: (0, 0)),    # resident
                    pl.BlockSpec((C, R), lambda b: (0, 0)),      # resident
                    pl.BlockSpec((R, C), lambda b: (0, 0)),      # resident
                ],
                out_specs=pl.BlockSpec((Bt, CHW), lambda b: (b, 0)),
            ),
            compiler_params=pltpu.CompilerParams(
                dimension_semantics=("parallel",),
                vmem_limit_bytes=vmem_limit),
        )(x, poolm, expandm, w1t, w2t)
        return out.reshape(B, C, H, W)

    # ---------- Paths 2/3: (B, C, HW) view ----------------------------------
    x = x_nchw.reshape(B, C, HW)                 # free view
    per_image = C * HW * elt

    single_pass_ok = (4 * per_image <= usable) and not force_two_pass
    if single_pass_ok or HW < 128:
        # Path 2: single pass, Bt images per grid step.
        Bt = int(min(B, max(1, budget // per_image)))
        nb = pl.cdiv(B, Bt)
        block_bytes = Bt * per_image
        vmem_limit = int(min(vmem_cap,
                             max(16 << 20,
                                 4 * block_bytes + 2 * weight_bytes + (4 << 20))))
        # TODO(synk): for B == 1 on v7x this leaves the second TensorCore idle;
        # a two-core HW split with partial pools exchanged via VMEM_SHARED would
        # recover ~2x HBM bandwidth there.
        out = pl.pallas_call(
            functools.partial(_se_3d_kernel, inv_hw=inv_hw),
            out_shape=jax.ShapeDtypeStruct((B, C, HW), dtype),
            grid_spec=pltpu.PrefetchScalarGridSpec(
                num_scalar_prefetch=0,
                grid=(nb,),
                in_specs=[
                    pl.BlockSpec((Bt, C, HW), lambda b: (b, 0, 0)),
                    pl.BlockSpec((C, R), lambda b: (0, 0)),
                    pl.BlockSpec((R, C), lambda b: (0, 0)),
                ],
                out_specs=pl.BlockSpec((Bt, C, HW), lambda b: (b, 0, 0)),
            ),
            compiler_params=pltpu.CompilerParams(
                dimension_semantics=("parallel",),
                vmem_limit_bytes=vmem_limit),
        )(x, w1t, w2t)
        return out.reshape(B, C, H, W)

    # Path 3: two-pass HW-tiled fallback (pool pass -> scale pass).  1.5x HBM
    # traffic, but keeps huge feature maps within the VMEM budget (v7x).
    hw_tile = (min(max(1, budget // (C * elt)), HW) // 128) * 128
    hw_tile = max(128, hw_tile)
    while 4 * C * hw_tile * elt > usable and hw_tile > 128:
        hw_tile -= 128
    n_hw = pl.cdiv(HW, hw_tile)
    needs_mask = (HW % hw_tile) != 0
    tile_bytes = C * hw_tile * elt

    pool_vmem = int(min(vmem_cap, max(16 << 20, 2 * tile_bytes + (4 << 20))))
    pooled = pl.pallas_call(
        functools.partial(_se_pool_kernel, hw_total=HW, hw_tile=hw_tile,
                          needs_mask=needs_mask),
        out_shape=jax.ShapeDtypeStruct((B, 1, C), jnp.float32),
        grid_spec=pltpu.PrefetchScalarGridSpec(
            num_scalar_prefetch=0,
            grid=(B, n_hw),
            in_specs=[pl.BlockSpec((1, C, hw_tile), lambda b, h: (b, 0, h))],
            out_specs=pl.BlockSpec((1, 1, C), lambda b, h: (b, 0, 0)),
        ),
        compiler_params=pltpu.CompilerParams(
            dimension_semantics=("parallel", "arbitrary"),
            vmem_limit_bytes=pool_vmem),
    )(x)

    scale_vmem = int(min(vmem_cap,
                         max(16 << 20, 4 * tile_bytes + 2 * weight_bytes + (4 << 20))))
    out = pl.pallas_call(
        _se_scale_kernel,
        out_shape=jax.ShapeDtypeStruct((B, C, HW), dtype),
        grid_spec=pltpu.PrefetchScalarGridSpec(
            num_scalar_prefetch=0,
            grid=(B, n_hw),
            in_specs=[
                pl.BlockSpec((1, C, hw_tile), lambda b, h: (b, 0, h)),
                pl.BlockSpec((1, 1, C), lambda b, h: (b, 0, 0)),
                pl.BlockSpec((C, R), lambda b, h: (0, 0)),
                pl.BlockSpec((R, C), lambda b, h: (0, 0)),
            ],
            out_specs=pl.BlockSpec((1, C, hw_tile), lambda b, h: (b, 0, h)),
        ),
        compiler_params=pltpu.CompilerParams(
            dimension_semantics=("parallel", "parallel"),
            vmem_limit_bytes=scale_vmem),
    )(x, pooled, w1t, w2t)
    return out.reshape(B, C, H, W)


# ----------------------------- reference & test -----------------------------


def se_block_reference(x_nchw, w1, w2):
    """Pure-JAX reference mirroring the PyTorch module."""
    y = jnp.mean(x_nchw, axis=(2, 3))              # (B, C)
    h = y @ w1.T                                   # (B, R)
    h = h * jax.nn.sigmoid(h)                      # SiLU
    s = jax.nn.sigmoid(h @ w2.T)                   # (B, C)
    return x_nchw * s[:, :, None, None]


if __name__ == "__main__":
    key = jax.random.PRNGKey(0)

    def make_case(case_key, B, C, H, W, reduction_ratio=16):
        R = max(C // reduction_ratio, 8)
        kx, k1, k2 = jax.random.split(case_key, 3)
        x = jax.random.normal(kx, (B, C, H, W), dtype=jnp.float32)
        w1 = jax.random.normal(k1, (R, C), dtype=jnp.float32) * 0.1   # fc1: C -> R
        w2 = jax.random.normal(k2, (C, R), dtype=jnp.float32) * 0.1   # fc2: R -> C
        return x, w1, w2

    # Primary shape implied by the module (B=2, C=4, 16x16): lane-dense flat
    # path.  Two extra tiny cases keep the other code paths compiled & tested.
    cases = [
        dict(name="flat", shape=(2, 4, 16, 16), kwargs={}),
        dict(name="3d", shape=(2, 64, 16, 16), kwargs={}),
        dict(name="two_pass", shape=(2, 16, 30, 30),
             kwargs=dict(target_block_bytes=1 << 14, force_two_pass=True)),
    ]

    ok = True
    max_err = 0.0
    for case, ck in zip(cases, jax.random.split(key, len(cases))):
        B, C, H, W = case["shape"]
        x, w1, w2 = make_case(ck, B, C, H, W)
        out = jax.block_until_ready(se_block(x, w1, w2, **case["kwargs"]))
        ref = jax.block_until_ready(se_block_reference(x, w1, w2))
        err = float(np.max(np.abs(np.asarray(out) - np.asarray(ref))))
        max_err = max(max_err, err)
        if out.shape != (B, C, H, W) or not np.allclose(
                np.asarray(out), np.asarray(ref), atol=1e-5, rtol=1e-5):
            ok = False

    if ok:
        print("KERNEL_OK")
    else:
        print("KERNEL_MISMATCH", max_err)
</pallas_src>

<mosaic_0001>
module attributes {stable_mosaic.version = 11 : i64} {
  func.func @_se_flat_kernel(%arg0: i32, %arg1: memref<2x1024xf32, #tpu.memory_space<vmem>>, %arg2: memref<1024x4xf32, #tpu.memory_space<vmem>>, %arg3: memref<4x1024xf32, #tpu.memory_space<vmem>>, %arg4: memref<4x8xf32, #tpu.memory_space<vmem>>, %arg5: memref<8x4xf32, #tpu.memory_space<vmem>>, %arg6: memref<2x1024xf32, #tpu.memory_space<vmem>>) attributes {dimension_semantics = [#tpu.dimension_semantics<parallel>], iteration_bounds = array<i64: 1>, scalar_prefetch = 0 : i64, scratch_operands = 0 : i64, tpu.core_type = #tpu.core_type<tc>, window_params = [{transform_indices = @transform_0, window_bounds = array<i64: 2, 1024>}, {pipeline_mode = #tpu.pipeline_mode<synchronous>, transform_indices = @transform_1, window_bounds = array<i64: 1024, 4>}, {pipeline_mode = #tpu.pipeline_mode<synchronous>, transform_indices = @transform_2, window_bounds = array<i64: 4, 1024>}, {pipeline_mode = #tpu.pipeline_mode<synchronous>, transform_indices = @transform_3, window_bounds = array<i64: 4, 8>}, {pipeline_mode = #tpu.pipeline_mode<synchronous>, transform_indices = @transform_4, window_bounds = array<i64: 8, 4>}, {transform_indices = @transform_5, window_bounds = array<i64: 2, 1024>}]} {
    %c0 = arith.constant 0 : index
    %c0_0 = arith.constant 0 : index
    %0 = vector.load %arg1[%c0, %c0_0] : memref<2x1024xf32, #tpu.memory_space<vmem>>, vector<2x1024xf32>
    %c0_1 = arith.constant 0 : index
    %c0_2 = arith.constant 0 : index
    %1 = vector.load %arg2[%c0_1, %c0_2] : memref<1024x4xf32, #tpu.memory_space<vmem>>, vector<1024x4xf32>
    %cst = arith.constant dense<0.000000e+00> : vector<2x4xf32>
    %2 = tpu.matmul %0, %1, %cst {dimension_numbers = #tpu.dot_dimension_numbers<[1], [0], [0], [1], [0, 0, 1, 1], [], []>} : vector<2x1024xf32>, vector<1024x4xf32>, vector<2x4xf32> -> vector<2x4xf32>
    %cst_3 = arith.constant 3.906250e-03 : f32
    %3 = vector.broadcast %cst_3 : f32 to vector<2x4xf32>
    %4 = arith.mulf %2, %3 : vector<2x4xf32>
    %c0_4 = arith.constant 0 : index
    %c0_5 = arith.constant 0 : index
    %5 = vector.load %arg4[%c0_4, %c0_5] : memref<4x8xf32, #tpu.memory_space<vmem>>, vector<4x8xf32>
    %cst_6 = arith.constant dense<0.000000e+00> : vector<2x8xf32>
    %6 = tpu.matmul %4, %5, %cst_6 {dimension_numbers = #tpu.dot_dimension_numbers<[1], [0], [0], [1], [0, 0, 1, 1], [], []>} : vector<2x4xf32>, vector<4x8xf32>, vector<2x8xf32> -> vector<2x8xf32>
    %7 = arith.negf %6 : vector<2x8xf32>
    %8 = math.exp %7 : vector<2x8xf32>
    %cst_7 = arith.constant 1.000000e+00 : f32
    %9 = vector.broadcast %cst_7 : f32 to vector<2x8xf32>
    %10 = arith.addf %9, %8 : vector<2x8xf32>
    %11 = arith.divf %9, %10 : vector<2x8xf32>
    %12 = arith.mulf %6, %11 : vector<2x8xf32>
    %c0_8 = arith.constant 0 : index
    %c0_9 = arith.constant 0 : index
    %13 = vector.load %arg5[%c0_8, %c0_9] : memref<8x4xf32, #tpu.memory_space<vmem>>, vector<8x4xf32>
    %cst_10 = arith.constant dense<0.000000e+00> : vector<2x4xf32>
    %14 = tpu.matmul %12, %13, %cst_10 {dimension_numbers = #tpu.dot_dimension_numbers<[1], [0], [0], [1], [0, 0, 1, 1], [], []>} : vector<2x8xf32>, vector<8x4xf32>, vector<2x4xf32> -> vector<2x4xf32>
    %15 = arith.negf %14 : vector<2x4xf32>
    %16 = math.exp %15 : vector<2x4xf32>
    %cst_11 = arith.constant 1.000000e+00 : f32
    %17 = vector.broadcast %cst_11 : f32 to vector<2x4xf32>
    %18 = arith.addf %17, %16 : vector<2x4xf32>
    %19 = arith.divf %17, %18 : vector<2x4xf32>
    %c0_12 = arith.constant 0 : index
    %c0_13 = arith.constant 0 : index
    %20 = vector.load %arg3[%c0_12, %c0_13] : memref<4x1024xf32, #tpu.memory_space<vmem>>, vector<4x1024xf32>
    %cst_14 = arith.constant dense<0.000000e+00> : vector<2x1024xf32>
    %21 = tpu.matmul %19, %20, %cst_14 {dimension_numbers = #tpu.dot_dimension_numbers<[1], [0], [0], [1], [0, 0, 1, 1], [], []>} : vector<2x4xf32>, vector<4x1024xf32>, vector<2x1024xf32> -> vector<2x1024xf32>
    %22 = arith.mulf %0, %21 : vector<2x1024xf32>
    %c0_15 = arith.constant 0 : index
    %c0_16 = arith.constant 0 : index
    %23 = vector.load %arg6[%c0_15, %c0_16] : memref<2x1024xf32, #tpu.memory_space<vmem>>, vector<2x1024xf32>
    tpu.vector_store %arg6[%c0_15, %c0_16], %22 {strides = array<i32>} : memref<2x1024xf32, #tpu.memory_space<vmem>>, vector<2x1024xf32>,
    return
  }
  func.func @transform_0(%arg0: i32) -> (i32, i32) {
    %c0_i32 = arith.constant 0 : i32
    %c0_i32_0 = arith.constant 0 : i32
    return %arg0, %c0_i32 : i32, i32
  }
  func.func @transform_1(%arg0: i32) -> (i32, i32) {
    %c0_i32 = arith.constant 0 : i32
    %c0_i32_0 = arith.constant 0 : i32
    %c0_i32_1 = arith.constant 0 : i32
    return %c0_i32, %c0_i32_0 : i32, i32
  }
  func.func @transform_2(%arg0: i32) -> (i32, i32) {
    %c0_i32 = arith.constant 0 : i32
    %c0_i32_0 = arith.constant 0 : i32
    %c0_i32_1 = arith.constant 0 : i32
    return %c0_i32, %c0_i32_0 : i32, i32
  }
  func.func @transform_3(%arg0: i32) -> (i32, i32) {
    %c0_i32 = arith.constant 0 : i32
    %c0_i32_0 = arith.constant 0 : i32
    %c0_i32_1 = arith.constant 0 : i32
    return %c0_i32, %c0_i32_0 : i32, i32
  }
  func.func @transform_4(%arg0: i32) -> (i32, i32) {
    %c0_i32 = arith.constant 0 : i32
    %c0_i32_0 = arith.constant 0 : i32
    %c0_i32_1 = arith.constant 0 : i32
    return %c0_i32, %c0_i32_0 : i32, i32
  }
  func.func @transform_5(%arg0: i32) -> (i32, i32) {
    %c0_i32 = arith.constant 0 : i32
    %c0_i32_0 = arith.constant 0 : i32
    return %arg0, %c0_i32 : i32, i32
  }
}

</mosaic_0001>

<bundles_post_ra>
// kernel: tpu_custom_call.1
= control target key start
LH: loop header
LB: loop body
LE: loop exit
PB: predicated region body
PF: predicated region fallthrough
CT: control target
= control target key end

     0   :  { %s1202_s0 = inlined_call_operand.vmem [shape: f32[2,1024], index: 0, kind: input, shape index: {}]   ;;  %s1203_s1 = inlined_call_operand.vmem [shape: f32[1024,4], index: 1, kind: input, shape index: {}]   ;;  %s1204_s2 = inlined_call_operand.vmem [shape: f32[4,1024], index: 2, kind: input, shape index: {}]   ;;  %s1205_s3 = inlined_call_operand.vmem [shape: f32[4,8], index: 3, kind: input, shape index: {}]   ;;  %s1206_s4 = inlined_call_operand.vmem [shape: f32[8,4], index: 4, kind: input, shape index: {}]   ;;  %s1207_s5 = inlined_call_operand.hbm [shape: f32[2,1024], index: 5, kind: output, shape index: {}]  }
   0x1   :  { %v38_v0 = vld [vmem:[%s1203_s1 + $0x78] sm:$0xff]  ;;  %v37_v2 = vld [vmem:[%s1203_s1 + $0x70] sm:$0xff]  ;;  %v36_v6 = vld [vmem:[%s1203_s1 + $0x68] sm:$0xff] }
   0x2   :  { %v70_v1 = vld [vmem:[%s1203_s1 + $0x178] sm:$0xff]  ;;  %172 = vmatpush.msra.mxu0 %v38_v0  ;;  %v69_v4 = vld [vmem:[%s1203_s1 + $0x170] sm:$0xff]  ;;  %v68_v8 = vld [vmem:[%s1203_s1 + $0x168] sm:$0xff] }
   0x3   :  { %212 = vmatpush.msra.mxu2 %v70_v1  ;;  %v54_v3 = vld [vmem:[%s1203_s1 + $0xf8] sm:$0xff]  ;;  %v53_v7 = vld [vmem:[%s1203_s1 + $0xf0] sm:$0xff]  ;;  %v52_v10 = vld [vmem:[%s1203_s1 + $0xe8] sm:$0xff] }
   0x4   :  { %v86_v5 = vld [vmem:[%s1203_s1 + $0x1f8] sm:$0xff]  ;;  %192 = vmatpush.msra.mxu1 %v54_v3  ;;  %173 = vmatpush.msra.mxu0 %v37_v2  ;;  %v85_v9 = vld [vmem:[%s1203_s1 + $0x1f0] sm:$0xff]  ;;  %v35_v11 = vld [vmem:[%s1203_s1 + $0x60] sm:$0xff] }
   0x5   :  { %232 = vmatpush.msra.mxu3 %v86_v5  ;;  %213 = vmatpush.msra.mxu2 %v69_v4  ;;  %v67_v12 = vld [vmem:[%s1203_s1 + $0x160] sm:$0xff]  ;;  %v84_v13 = vld [vmem:[%s1203_s1 + $0x1e8] sm:$0xff]  ;;  %v34_v16 = vld [vmem:[%s1203_s1 + $0x58] sm:$0xff] }
   0x6   :  { %193 = vmatpush.msra.mxu1 %v53_v7  ;;  %174 = vmatpush.msra.mxu0 %v36_v6  ;;  %v51_v14 = vld [vmem:[%s1203_s1 + $0xe0] sm:$0xff]  ;;  %v66_v17 = vld [vmem:[%s1203_s1 + $0x158] sm:$0xff]  ;;  %v33_v20 = vld [vmem:[%s1203_s1 + $0x50] sm:$0xff] }
   0x7   :  { %233 = vmatpush.msra.mxu3 %v85_v9  ;;  %214 = vmatpush.msra.mxu2 %v68_v8  ;;  %v83_v15 = vld [vmem:[%s1203_s1 + $0x1e0] sm:$0xff]  ;;  %v50_v18 = vld [vmem:[%s1203_s1 + $0xd8] sm:$0xff]  ;;  %v65_v21 = vld [vmem:[%s1203_s1 + $0x150] sm:$0xff] }
   0x8   :  { %194 = vmatpush.msra.mxu1 %v52_v10  ;;  %175 = vmatpush.msra.mxu0 %v35_v11  ;;  %v82_v19 = vld [vmem:[%s1203_s1 + $0x1d8] sm:$0xff]  ;;  %v49_v22 = vld [vmem:[%s1203_s1 + $0xd0] sm:$0xff]  ;;  %v32_v24 = vld [vmem:[%s1203_s1 + $0x48] sm:$0xff] }
   0x9   :  { %234 = vmatpush.msra.mxu3 %v84_v13  ;;  %215 = vmatpush.msra.mxu2 %v67_v12  ;;  %v81_v23 = vld [vmem:[%s1203_s1 + $0x1d0] sm:$0xff]  ;;  %v64_v25 = vld [vmem:[%s1203_s1 + $0x148] sm:$0xff]  ;;  %v31_v28 = vld [vmem:[%s1203_s1 + $0x40] sm:$0xff] }
   0xa   :  { %195 = vmatpush.msra.mxu1 %v51_v14  ;;  %176 = vmatpush.msra.mxu0 %v34_v16  ;;  %v48_v26 = vld [vmem:[%s1203_s1 + $0xc8] sm:$0xff]  ;;  %v63_v29 = vld [vmem:[%s1203_s1 + $0x140] sm:$0xff]  ;;  %v30_v32 = vld [vmem:[%s1203_s1 + $0x38] sm:$0xff] }
   0xb   :  { %235 = vmatpush.msra.mxu3 %v83_v15  ;;  %216 = vmatpush.msra.mxu2 %v66_v17  ;;  %v80_v27 = vld [vmem:[%s1203_s1 + $0x1c8] sm:$0xff]  ;;  %v47_v30 = vld [vmem:[%s1203_s1 + $0xc0] sm:$0xff]  ;;  %v62_v33 = vld [vmem:[%s1203_s1 + $0x138] sm:$0xff] }
   0xc   :  { %196 = vmatpush.msra.mxu1 %v50_v18  ;;  %177 = vmatpush.msra.mxu0 %v33_v20  ;;  %v79_v31 = vld [vmem:[%s1203_s1 + $0x1c0] sm:$0xff]  ;;  %v46_v34 = vld [vmem:[%s1203_s1 + $0xb8] sm:$0xff]  ;;  %v29_v36 = vld [vmem:[%s1203_s1 + $0x30] sm:$0xff] }
   0xd   :  { %236 = vmatpush.msra.mxu3 %v82_v19  ;;  %217 = vmatpush.msra.mxu2 %v65_v21  ;;  %v78_v35 = vld [vmem:[%s1203_s1 + $0x1b8] sm:$0xff]  ;;  %v61_v37 = vld [vmem:[%s1203_s1 + $0x130] sm:$0xff]  ;;  %v28_v40 = vld [vmem:[%s1203_s1 + $0x28] sm:$0xff] }
   0xe   :  { %197 = vmatpush.msra.mxu1 %v49_v22  ;;  %178 = vmatpush.msra.mxu0 %v32_v24  ;;  %v45_v38 = vld [vmem:[%s1203_s1 + $0xb0] sm:$0xff]  ;;  %v60_v41 = vld [vmem:[%s1203_s1 + $0x128] sm:$0xff]  ;;  %v27_v44 = vld [vmem:[%s1203_s1 + $0x20] sm:$0xff] }
   0xf   :  { %237 = vmatpush.msra.mxu3 %v81_v23  ;;  %218 = vmatpush.msra.mxu2 %v64_v25  ;;  %v77_v39 = vld [vmem:[%s1203_s1 + $0x1b0] sm:$0xff]  ;;  %v44_v42 = vld [vmem:[%s1203_s1 + $0xa8] sm:$0xff]  ;;  %v59_v45 = vld [vmem:[%s1203_s1 + $0x120] sm:$0xff] }
  0x10   :  { %198 = vmatpush.msra.mxu1 %v48_v26  ;;  %179 = vmatpush.msra.mxu0 %v31_v28  ;;  %v76_v43 = vld [vmem:[%s1203_s1 + $0x1a8] sm:$0xff]  ;;  %v43_v46 = vld [vmem:[%s1203_s1 + $0xa0] sm:$0xff]  ;;  %v26_v48 = vld [vmem:[%s1203_s1 + $0x18] sm:$0xff] }
  0x11   :  { %238 = vmatpush.msra.mxu3 %v80_v27  ;;  %219 = vmatpush.msra.mxu2 %v63_v29  ;;  %v75_v47 = vld [vmem:[%s1203_s1 + $0x1a0] sm:$0xff]  ;;  %v58_v49 = vld [vmem:[%s1203_s1 + $0x118] sm:$0xff]  ;;  %v25_v52 = vld [vmem:[%s1203_s1 + $0x10] sm:$0xff] }
  0x12   :  { %199 = vmatpush.msra.mxu1 %v47_v30  ;;  %180 = vmatpush.msra.mxu0 %v30_v32  ;;  %v42_v50 = vld [vmem:[%s1203_s1 + $0x98] sm:$0xff]  ;;  %v57_v53 = vld [vmem:[%s1203_s1 + $0x110] sm:$0xff]  ;;  %v24_v56 = vld [vmem:[%s1203_s1 + $0x8] sm:$0xff] }
  0x13   :  { %239 = vmatpush.msra.mxu3 %v79_v31  ;;  %220 = vmatpush.msra.mxu2 %v62_v33  ;;  %v74_v51 = vld [vmem:[%s1203_s1 + $0x198] sm:$0xff]  ;;  %v41_v54 = vld [vmem:[%s1203_s1 + $0x90] sm:$0xff]  ;;  %v56_v57 = vld [vmem:[%s1203_s1 + $0x108] sm:$0xff] }
  0x14   :  { %200 = vmatpush.msra.mxu1 %v46_v34  ;;  %181 = vmatpush.msra.mxu0 %v29_v36  ;;  %v73_v55 = vld [vmem:[%s1203_s1 + $0x190] sm:$0xff]  ;;  %v40_v58 = vld [vmem:[%s1203_s1 + $0x88] sm:$0xff]  ;;  %v23_v60 = vld [vmem:[%s1203_s1] sm:$0xff] }
  0x15   :  { %240 = vmatpush.msra.mxu3 %v78_v35  ;;  %221 = vmatpush.msra.mxu2 %v61_v37  ;;  %v72_v59 = vld [vmem:[%s1203_s1 + $0x188] sm:$0xff]  ;;  %v55_v61 = vld [vmem:[%s1203_s1 + $0x100] sm:$0xff]  ;;  %v102_v62 = vld [vmem:[%s1203_s1 + $0x278] sm:$0xff] }
  0x16   :  { %201 = vmatpush.msra.mxu1 %v45_v38  ;;  %182 = vmatpush.msra.mxu0 %v28_v40  ;;  %v134_v63 = vld [vmem:[%s1203_s1 + $0x378] sm:$0xff]  ;;  %v39_v0 = vld [vmem:[%s1203_s1 + $0x80] sm:$0xff]  ;;  %v101_v2 = vld [vmem:[%s1203_s1 + $0x270] sm:$0xff] }
  0x17   :  { %241 = vmatpush.msra.mxu3 %v77_v39  ;;  %222 = vmatpush.msra.mxu2 %v60_v41  ;;  %v71_v1 = vld [vmem:[%s1203_s1 + $0x180] sm:$0xff]  ;;  %v118_v3 = vld [vmem:[%s1203_s1 + $0x2f8] sm:$0xff]  ;;  %v133_v4 = vld [vmem:[%s1203_s1 + $0x370] sm:$0xff] }
  0x18   :  { %202 = vmatpush.msra.mxu1 %v44_v42  ;;  %183 = vmatpush.msra.mxu0 %v27_v44  ;;  %v150_v5 = vld [vmem:[%s1203_s1 + $0x3f8] sm:$0xff]  ;;  %v100_v6 = vld [vmem:[%s1203_s1 + $0x268] sm:$0xff]  ;;  %v117_v7 = vld [vmem:[%s1203_s1 + $0x2f0] sm:$0xff] }
  0x19   :  { %242 = vmatpush.msra.mxu3 %v76_v43  ;;  %223 = vmatpush.msra.mxu2 %v59_v45  ;;  %v132_v8 = vld [vmem:[%s1203_s1 + $0x368] sm:$0xff]  ;;  %v149_v9 = vld [vmem:[%s1203_s1 + $0x3f0] sm:$0xff]  ;;  %v99_v10 = vld [vmem:[%s1203_s1 + $0x260] sm:$0xff] }
  0x1a   :  { %203 = vmatpush.msra.mxu1 %v43_v46  ;;  %184 = vmatpush.msra.mxu0 %v26_v48  ;;  %v116_v11 = vld [vmem:[%s1203_s1 + $0x2e8] sm:$0xff]  ;;  %v990_v12 = vld [vmem:[%s1202_s0] sm:$0xff]  ;;  %v98_v15 = vld [vmem:[%s1203_s1 + $0x258] sm:$0xff] }
  0x1b   :  { %243 = vmatpush.msra.mxu3 %v75_v47  ;;  %224 = vmatpush.msra.mxu2 %v58_v49  ;;  %v131_v13 = vld [vmem:[%s1203_s1 + $0x360] sm:$0xff]  ;;  %v148_v14 = vld [vmem:[%s1203_s1 + $0x3e8] sm:$0xff]  ;;  %153 = vst [vmem:[#allocation1] ss:$4 sm:$0xff] %v990_v12  ;;  %v130_v17 = vld [vmem:[%s1203_s1 + $0x358] sm:$0xff] }
  0x1c   :  { %204 = vmatpush.msra.mxu1 %v42_v50  ;;  %185 = vmatpush.msra.mxu0 %v25_v52  ;;  %v115_v16 = vld [vmem:[%s1203_s1 + $0x2e0] sm:$0xff]  ;;  %v97_v19 = vld [vmem:[%s1203_s1 + $0x250] sm:$0xff]  ;;  %v114_v20 = vld [vmem:[%s1203_s1 + $0x2d8] sm:$0xff] }
  0x1d   :  { %244 = vmatpush.msra.mxu3 %v74_v51  ;;  %225 = vmatpush.msra.mxu2 %v57_v53  ;;  %v147_v18 = vld [vmem:[%s1203_s1 + $0x3e0] sm:$0xff]  ;;  %v129_v21 = vld [vmem:[%s1203_s1 + $0x350] sm:$0xff]  ;;  %v146_v22 = vld [vmem:[%s1203_s1 + $0x3d8] sm:$0xff] }
  0x1e   :  { %205 = vmatpush.msra.mxu1 %v41_v54  ;;  %186 = vmatpush.msra.mxu0 %v24_v56  ;;  %v96_v23 = vld [vmem:[%s1203_s1 + $0x248] sm:$0xff]  ;;  %v113_v24 = vld [vmem:[%s1203_s1 + $0x2d0] sm:$0xff]  ;;  %v95_v27 = vld [vmem:[%s1203_s1 + $0x240] sm:$0xff] }
  0x1f   :  { %245 = vmatpush.msra.mxu3 %v73_v55  ;;  %226 = vmatpush.msra.mxu2 %v56_v57  ;;  %v128_v25 = vld [vmem:[%s1203_s1 + $0x348] sm:$0xff]  ;;  %v145_v26 = vld [vmem:[%s1203_s1 + $0x3d0] sm:$0xff]  ;;  %v127_v29 = vld [vmem:[%s1203_s1 + $0x340] sm:$0xff] }
  0x20   :  { %206 = vmatpush.msra.mxu1 %v40_v58  ;;  %187 = vmatpush.msra.mxu0 %v23_v60  ;;  %v112_v28 = vld [vmem:[%s1203_s1 + $0x2c8] sm:$0xff]  ;;  %v94_v32 = vld [vmem:[%s1203_s1 + $0x238] sm:$0xff]  ;;  %v111_v33 = vld [vmem:[%s1203_s1 + $0x2c0] sm:$0xff] }
  0x21   :  { %246 = vmatpush.msra.mxu3 %v72_v59  ;;  %227 = vmatpush.msra.mxu2 %v55_v61  ;;  %v144_v30 = vld [vmem:[%s1203_s1 + $0x3c8] sm:$0xff]  ;;  %v426_v35 = vld [vmem:[%s1204_s2] sm:$0xff]  ;;  %v126_v40 = vld [vmem:[%s1203_s1 + $0x338] sm:$0xff] }
  0x22   :  { %252 = vmatpush.msrb.mxu0 %v102_v62  ;;  %207 = vmatpush.msra.mxu1 %v39_v0  ;;  %v427_v31 = vld [vmem:[%s1204_s2 + $0x8] sm:$0xff]  ;;  %v158_v34 = vld.sshfl [vmem:[#allocation1 + $0x10] sm:$0xff pattern:$0x73625140]  ;;  %v143_v41 = vld [vmem:[%s1203_s1 + $0x3c0] sm:$0xff] }
  0x23   :  { %292 = vmatpush.msrb.mxu2 %v134_v63  ;;  %247 = vmatpush.msra.mxu3 %v71_v1  ;;  %v156_v36 = vld.sshfl [vmem:[#allocation1] sm:$0xff pattern:$0x73625140]  ;;  %v159_v37 = vld.sshfl [vmem:[#allocation1 + $0x18] sm:$0xff pattern:$0x73625140] }
  0x24   :  { %253 = vmatpush.msrb.mxu0 %v101_v2  ;;  %272 = vmatpush.msrb.mxu1 %v118_v3  ;;  %436 = vst [vmem:[#allocation1 + $0x10] ss:$2 sm:$0xff] %v427_v31  ;;  %v157_v38 = vld.sshfl [vmem:[#allocation1 + $0x8] sm:$0xff pattern:$0x73625140] }
  0x25   :  { %293 = vmatpush.msrb.mxu2 %v133_v4  ;;  %312 = vmatpush.msrb.mxu3 %v150_v5  ;;  %v1062_v39 = vld [vmem:[%s1202_s0 + $0x8] sm:$0xff]  ;;  %434 = vst [vmem:[#allocation1] ss:$2 sm:$0xff] %v426_v35 }
  0x26   :  { %254 = vmatpush.msrb.mxu0 %v100_v6  ;;  %273 = vmatpush.msrb.mxu1 %v117_v7 }
  0x27   :  { %294 = vmatpush.msrb.mxu2 %v132_v8  ;;  %313 = vmatpush.msrb.mxu3 %v149_v9 }
  0x28   :  { %255 = vmatpush.msrb.mxu0 %v99_v10  ;;  %274 = vmatpush.msrb.mxu1 %v116_v11 }
  0x29   :  { %295 = vmatpush.msrb.mxu2 %v131_v13  ;;  %314 = vmatpush.msrb.mxu3 %v148_v14 }
  0x2a   :  { %256 = vmatpush.msrb.mxu0 %v98_v15  ;;  %275 = vmatpush.msrb.mxu1 %v115_v16 }
  0x2b   :  { %296 = vmatpush.msrb.mxu2 %v130_v17  ;;  %315 = vmatpush.msrb.mxu3 %v147_v18 }
  0x2c   :  { %257 = vmatpush.msrb.mxu0 %v97_v19  ;;  %276 = vmatpush.msrb.mxu1 %v114_v20 }
  0x2d   :  { %297 = vmatpush.msrb.mxu2 %v129_v21  ;;  %316 = vmatpush.msrb.mxu3 %v146_v22 }
  0x2e   :  { %258 = vmatpush.msrb.mxu0 %v96_v23  ;;  %277 = vmatpush.msrb.mxu1 %v113_v24 }
  0x2f   :  { %298 = vmatpush.msrb.mxu2 %v128_v25  ;;  %317 = vmatpush.msrb.mxu3 %v145_v26 }
  0x30   :  { %259 = vmatpush.msrb.mxu0 %v95_v27  ;;  %278 = vmatpush.msrb.mxu1 %v112_v28 }
  0x31   :  { %10 = vsyncpa [#allocation3], 0  ;;  %299 = vmatpush.msrb.mxu2 %v127_v29  ;;  %318 = vmatpush.msrb.mxu3 %v144_v30  ;;  %v93_v42 = vld [vmem:[%s1203_s1 + $0x230] sm:$0xff]  ;;  %v110_v43 = vld [vmem:[%s1203_s1 + $0x2b8] sm:$0xff]  ;;  %155 = vst [vmem:[#allocation1 + $0x20] ss:$4 sm:$0xff] %v1062_v39 }
  0x32   :  { %260 = vmatpush.msrb.mxu0 %v94_v32  ;;  %279 = vmatpush.msrb.mxu1 %v111_v33  ;;  %v125_v44 = vld [vmem:[%s1203_s1 + $0x330] sm:$0xff]  ;;  %v142_v45 = vld [vmem:[%s1203_s1 + $0x3b8] sm:$0xff]  ;;  %v92_v46 = vld [vmem:[%s1203_s1 + $0x228] sm:$0xff]  ;;  %vm338_vm0 = vcmask 1043456   ;;  %vm334_vm1 = vcmask 31744   ;;  %vm383_vm6 = vcmask 64512  }
  0x33   :  { %300 = vmatpush.msrb.mxu2 %v126_v40  ;;  %319 = vmatpush.msrb.mxu3 %v143_v41  ;;  %v109_v47 = vld [vmem:[%s1203_s1 + $0x2b0] sm:$0xff]  ;;  %v124_v48 = vld [vmem:[%s1203_s1 + $0x328] sm:$0xff]  ;;  %v91_v50 = vld [vmem:[%s1203_s1 + $0x220] sm:$0xff]  ;;  %vm644_vm11 = vcmask 1045508   ;;  %vm642_vm12 = vcmask 1041408   ;;  %s663_s11 = sshll.u32 %s1207_s5, 4  ;;  %s664_s11 = int_to_ptr.hbm [resolvable:$true] %s663_s11 }
  0x34   :  { %261 = vmatpush.msrb.mxu0 %v93_v42  ;;  %280 = vmatpush.msrb.mxu1 %v110_v43  ;;  %v141_v49 = vld [vmem:[%s1203_s1 + $0x3b0] sm:$0xff]  ;;  %v108_v51 = vld [vmem:[%s1203_s1 + $0x2a8] sm:$0xff]  ;;  %v123_v52 = vld [vmem:[%s1203_s1 + $0x320] sm:$0xff] }
  0x35   :  { %301 = vmatpush.msrb.mxu2 %v125_v44  ;;  %320 = vmatpush.msrb.mxu3 %v142_v45  ;;  %v140_v53 = vld [vmem:[%s1203_s1 + $0x3a8] sm:$0xff]  ;;  %v90_v54 = vld [vmem:[%s1203_s1 + $0x218] sm:$0xff]  ;;  %v107_v55 = vld [vmem:[%s1203_s1 + $0x2a0] sm:$0xff] }
  0x36   :  { %262 = vmatpush.msrb.mxu0 %v92_v46  ;;  %281 = vmatpush.msrb.mxu1 %v109_v47  ;;  %v428_v56 = vld [vmem:[%s1204_s2 + $0x10] sm:$0xff]  ;;  %v122_v57 = vld [vmem:[%s1203_s1 + $0x318] sm:$0xff]  ;;  %v139_v62 = vld [vmem:[%s1203_s1 + $0x3a0] sm:$0xff] }
  0x37   :  { %302 = vmatpush.msrb.mxu2 %v124_v48  ;;  %321 = vmatpush.msrb.mxu3 %v141_v49  ;;  %v429_v59 = vld [vmem:[%s1204_s2 + $0x18] sm:$0xff]  ;;  %v89_v0 = vld [vmem:[%s1203_s1 + $0x210] sm:$0xff]  ;;  %v88_v4 = vld [vmem:[%s1203_s1 + $0x208] sm:$0xff] }
  0x38   :  { %228 = vmatmul.f32.vlgmr.msra.gmra.mxu2 %v158_v34  ;;  %263 = vmatpush.msrb.mxu0 %v91_v50  ;;  %v160_v58 = vld.sshfl [vmem:[#allocation1 + $0x20] sm:$0xff pattern:$0x73625140]  ;;  %v162_v60 = vld.sshfl [vmem:[#allocation1 + $0x30] sm:$0xff pattern:$0x73625140] }
  0x39   :  { %282 = vmatpush.msrb.mxu1 %v108_v51  ;;  %303 = vmatpush.msrb.mxu2 %v123_v52  ;;  %v161_v61 = vld.sshfl [vmem:[#allocation1 + $0x28] sm:$0xff pattern:$0x73625140]  ;;  %v163_v63 = vld.sshfl [vmem:[#allocation1 + $0x38] sm:$0xff pattern:$0x73625140] }
  0x3a   :  { %322 = vmatpush.msrb.mxu3 %v140_v53  ;;  %188 = vmatmul.f32.vlgmr.msra.gmra.mxu0 %v156_v36  ;;  %438 = vst [vmem:[#allocation1 + $0x20] ss:$2 sm:$0xff] %v428_v56  ;;  %v106_v1 = vld [vmem:[%s1203_s1 + $0x298] sm:$0xff]  ;;  %v121_v2 = vld [vmem:[%s1203_s1 + $0x310] sm:$0xff]  ;;  %v120_v6 = vld [vmem:[%s1203_s1 + $0x308] sm:$0xff] }
  0x3b   :  { %248 = vmatmul.f32.vlgmr.msra.gmra.mxu3 %v159_v37  ;;  %264 = vmatpush.msrb.mxu0 %v90_v54  ;;  %440 = vst [vmem:[#allocation1 + $0x30] ss:$2 sm:$0xff] %v429_v59  ;;  %v138_v3 = vld [vmem:[%s1203_s1 + $0x398] sm:$0xff]  ;;  %v105_v5 = vld [vmem:[%s1203_s1 + $0x290] sm:$0xff]  ;;  %v87_v8 = vld [vmem:[%s1203_s1 + $0x200] sm:$0xff] }
  0x3c   :  { %283 = vmatpush.msrb.mxu1 %v107_v55  ;;  %304 = vmatpush.msrb.mxu2 %v122_v57  ;;  %v137_v7 = vld [vmem:[%s1203_s1 + $0x390] sm:$0xff]  ;;  %v104_v9 = vld [vmem:[%s1203_s1 + $0x288] sm:$0xff]  ;;  %v119_v10 = vld [vmem:[%s1203_s1 + $0x300] sm:$0xff] }
  0x3d   :  { %323 = vmatpush.msrb.mxu3 %v139_v62  ;;  %208 = vmatmul.f32.vlgmr.msra.gmra.mxu1 %v157_v38  ;;  %v136_v11 = vld [vmem:[%s1203_s1 + $0x388] sm:$0xff]  ;;  %v103_v13 = vld [vmem:[%s1203_s1 + $0x280] sm:$0xff]  ;;  %v443_v51 = vld.sshfl [vmem:[#allocation1 + $0x10] sm:$0xff pattern:$0x75316420] }
  0x3e   :  { %265 = vmatpush.msrb.mxu0 %v89_v0  ;;  %284 = vmatpush.msrb.mxu1 %v106_v1  ;;  %v135_v14 = vld [vmem:[%s1203_s1 + $0x380] sm:$0xff]  ;;  %v442_v49 = vld.sshfl [vmem:[#allocation1 + $0x8] sm:$0xff pattern:$0x75316420] }
  0x3f   :  { %305 = vmatpush.msrb.mxu2 %v121_v2  ;;  %324 = vmatpush.msrb.mxu3 %v138_v3  ;;  %v333_v15 = vld [vmem:[%s1205_s3] sm:$0xf]  ;;  %v444_v52 = vld.sshfl [vmem:[#allocation1 + $0x18] sm:$0xff pattern:$0x75316420] }
  0x40   :  { %266 = vmatpush.msrb.mxu0 %v88_v4  ;;  %285 = vmatpush.msrb.mxu1 %v105_v5  ;;  %v382_v32 = vld [vmem:[%s1206_s4] sm:$0xff]  ;;  %s728_s4 = smov [#allocation2]  }
  0x41   :  { %306 = vmatpush.msrb.mxu2 %v120_v6  ;;  %325 = vmatpush.msrb.mxu3 %v137_v7  ;;  %v441_v50 = vld.sshfl [vmem:[#allocation1] sm:$0xff pattern:$0x75316420]  ;;  %v446_v53 = vld.sshfl [vmem:[#allocation1 + $0x28] sm:$0xff pattern:$0x75316420] }
  0x42   :  { %267 = vmatpush.msrb.mxu0 %v87_v8  ;;  %286 = vmatpush.msrb.mxu1 %v104_v9  ;;  %v445_v54 = vld.sshfl [vmem:[#allocation1 + $0x20] sm:$0xff pattern:$0x75316420]  ;;  %v447_v55 = vld.sshfl [vmem:[#allocation1 + $0x30] sm:$0xff pattern:$0x75316420] }
  0x43   :  { %307 = vmatpush.msrb.mxu2 %v119_v10  ;;  %326 = vmatpush.msrb.mxu3 %v136_v11  ;;  %v448_v56 = vld.sshfl [vmem:[#allocation1 + $0x38] sm:$0xff pattern:$0x75316420]  ;;  %s661_s2 = sshll.u32 %s728_s4, 4  ;;  %s662_s2 = int_to_ptr.vmem [resolvable:$true] %s661_s2 }
  0x44   :  { %268 = vmatmul.f32.vlgmr.msrb.gmra.mxu0 %v160_v58  ;;  %308 = vmatmul.f32.vlgmr.msrb.gmra.mxu2 %v162_v60 }
  0x45   :  { %287 = vmatpush.msrb.mxu1 %v103_v13  ;;  %327 = vmatpush.msrb.mxu3 %v135_v14 }
  0x46   :  { %288 = vmatmul.f32.vlgmr.msrb.gmra.mxu1 %v161_v61  ;;  %328 = vmatmul.f32.vlgmr.msrb.gmra.mxu3 %v163_v63 }
  0x47   :  { %672 = vmatpush.msk.msra.mxu0 %vm338_vm0, %v333_v15  ;;  %402 = vmatpush.msra.mxu1 %v382_v32 }
  0x48   :  { %679 = vmatpush.msk.msra.mxu3 %vm338_vm0, %v442_v49  ;;  %677 = vmatpush.msk.msra.mxu2 %vm338_vm0, %v441_v50 }
  0x49   :  { %681 = vmatpush.msk.msrb.mxu0 %vm338_vm0, %v443_v51  ;;  %683 = vmatpush.msk.msrb.mxu1 %vm338_vm0, %v444_v52 }
  0x4a   :  { %687 = vmatpush.msk.msrb.mxu3 %vm338_vm0, %v446_v53  ;;  %685 = vmatpush.msk.msrb.mxu2 %vm338_vm0, %v445_v54 }
  0xb7   :  { %v189_v16 = vpop.f32.mrf.mxu0 }
  0xba   :  { %v209_v17 = vpop.f32.mrf.mxu1 }
  0xbb   :  { %v210_v18 = vadd.f32 %v209_v17, %v189_v16  ;;  %v229_v19 = vpop.f32.mrf.mxu2 }
  0xbd   :  { %v230_v20 = vadd.f32 %v229_v19, %v210_v18 }
  0xbe   :  { %v249_v21 = vpop.f32.mrf.mxu3 }
  0xbf   :  { %v250_v22 = vadd.f32 %v249_v21, %v230_v20 }
  0xc1   :  { %v269_v23 = vpop.f32.mrf.mxu0 }
  0xc2   :  { %v270_v24 = vadd.f32 %v269_v23, %v250_v22 }
  0xc3   :  { %v289_v25 = vpop.f32.mrf.mxu1 }
  0xc4   :  { %v290_v26 = vadd.f32 %v289_v25, %v270_v24 }
  0xc7   :  { %v309_v27 = vpop.f32.mrf.mxu2 }
  0xc8   :  { %v310_v28 = vadd.f32 %v309_v27, %v290_v26 }
  0xc9   :  { %v329_v29 = vpop.f32.mrf.mxu3 }
  0xca   :  { %v330_v30 = vadd.f32 %v329_v29, %v310_v28 }
  0xcc   :  { %v332_v31 = vmul.f32 0.00390625, %v330_v30 }
  0xce   :  { %673 = vmatmul.msk.f32.vlgmr.msra.gmra.mxu0 %vm334_vm1, %v332_v31 }
  0xcf   :  { %689 = vmatpush.msk.msra.mxu0 %vm338_vm0, %v447_v55 }
 0x14b   :  { %v359_v33 = vpop.f32.mrf.mxu0 }
 0x14c   :  { %v674_v34 = vmul.f32 -1.442695, %v359_v33 }
 0x14e   :  { %694 = vpow2.f32 %v674_v34 }
 0x154   :  { %v695_v35 = vpop.eup %694 }
 0x155   :  { %v365_v36 = vadd.f32 1.0, %v695_v35 }
 0x157   :  { %696 = vrcp.f32 %v365_v36  ;;  %v377_v41 = vand.u32 2147483648, %v365_v36  ;;  %v375_v43 = vand.u32 2147483647, %v365_v36  ;;  %vm371_vm3 = vweird.f32 %v365_v36 }
 0x159   :  { %v378_v45 = vor.u32 1.1754944e-38, %v377_v41  ;;  %vm376_vm5 = vcmp.eq.f32.partialorder %v375_v43, 8.507059e+37 }
 0x15d   :  { %v697_v37 = vpop.eup %696 }
 0x15e   :  { %v367_v38 = vmul.f32 %v697_v37, %v365_v36  ;;  %vm372_vm2 = vweird.f32 %v697_v37 }
 0x15f   :  { %vm373_vm4 = vmor %vm371_vm3, %vm372_vm2 }
 0x160   :  { %v368_v40 = vsub.f32 1.0, %v367_v38 }
 0x162   :  { %v369_v42 = vmul.f32 %v697_v37, %v368_v40 }
 0x164   :  { %v370_v44 = vadd.f32 %v697_v37, %v369_v42 }
 0x166   :  { %v374_v46 = vsel %vm373_vm4, %v697_v37, %v370_v44 }
 0x167   :  { %v379_v47 = vsel %vm376_vm5, %v378_v45, %v374_v46 }
 0x168   :  { %v381_v48 = vmul.f32 %v379_v47, %v359_v33 }
 0x16a   :  { %675 = vmatmul.msk.f32.vlgmr.msra.gmra.mxu1 %vm383_vm6, %v381_v48 }
 0x16b   :  { %691 = vmatpush.msk.msra.mxu1 %vm338_vm0, %v448_v56 }
 0x1e7   :  { %v404_v57 = vpop.f32.mrf.mxu1 }
 0x1e8   :  { %v676_v58 = vmul.f32 -1.442695, %v404_v57 }
 0x1ea   :  { %698 = vpow2.f32 %v676_v58 }
 0x1f0   :  { %v699_v59 = vpop.eup %698 }
 0x1f1   :  { %v410_v60 = vadd.f32 1.0, %v699_v59 }
 0x1f3   :  { %700 = vrcp.f32 %v410_v60  ;;  %v422_v0 = vand.u32 2147483648, %v410_v60  ;;  %v420_v2 = vand.u32 2147483647, %v410_v60  ;;  %vm416_vm8 = vweird.f32 %v410_v60 }
 0x1f5   :  { %v423_v4 = vor.u32 1.1754944e-38, %v422_v0  ;;  %vm421_vm10 = vcmp.eq.f32.partialorder %v420_v2, 8.507059e+37 }
 0x1f9   :  { %v701_v61 = vpop.eup %700 }
 0x1fa   :  { %v412_v62 = vmul.f32 %v701_v61, %v410_v60  ;;  %vm417_vm7 = vweird.f32 %v701_v61 }
 0x1fb   :  { %vm418_vm9 = vmor %vm416_vm8, %vm417_vm7 }
 0x1fc   :  { %v413_v63 = vsub.f32 1.0, %v412_v62 }
 0x1fe   :  { %v414_v1 = vmul.f32 %v701_v61, %v413_v63 }
 0x200   :  { %v415_v3 = vadd.f32 %v701_v61, %v414_v1 }
 0x202   :  { %v419_v5 = vsel %vm418_vm9, %v701_v61, %v415_v3 }
 0x203   :  { %v424_v6 = vsel %vm421_vm10, %v423_v4, %v419_v5 }
 0x204   :  { %678 = vmatmul.msk.f32.vlgmr.msra.gmra.mxu2 %vm334_vm1, %v424_v6  ;;  %680 = vmatmul.msk.f32.vlgmr.msra.gmra.mxu3 %vm334_vm1, %v424_v6 }
 0x205   :  { %682 = vmatmul.msk.f32.vlgmr.msrb.gmra.mxu0 %vm334_vm1, %v424_v6  ;;  %684 = vmatmul.msk.f32.vlgmr.msrb.gmra.mxu1 %vm334_vm1, %v424_v6 }
 0x20c   :  { %686 = vmatmul.msk.f32.vlgmr.msrb.gmra.mxu2 %vm334_vm1, %v424_v6  ;;  %688 = vmatmul.msk.f32.vlgmr.msrb.gmra.mxu3 %vm334_vm1, %v424_v6 }
 0x20d   :  { %690 = vmatmul.msk.f32.vlgmr.msra.gmra.mxu0 %vm334_vm1, %v424_v6  ;;  %692 = vmatmul.msk.f32.vlgmr.msra.gmra.mxu1 %vm334_vm1, %v424_v6 }
 0x282   :  { %v525_v7 = vpop.f32.mrf.mxu0  ;;  %v545_v8 = vpop.f32.mrf.mxu1 }
 0x283   :  { %v637_v9 = vrot.slane %v525_v7, 4  ;;  %v638_v10 = vrot.slane %v545_v8, 2 }
 0x285   :  { %v645_v15 = vsel %vm644_vm11, %v637_v9, %v638_v10 }
 0x287   :  { %v485_v11 = vpop.f32.mrf.mxu2  ;;  %v505_v13 = vpop.f32.mrf.mxu3 }
 0x288   :  { %v636_v14 = vrot.slane %v505_v13, 6 }
 0x28a   :  { %v643_v16 = vsel %vm642_vm12, %v485_v11, %v636_v14  ;;  %v605_v17 = vpop.f32.mrf.mxu0  ;;  %v625_v18 = vpop.f32.mrf.mxu1 }
 0x28b   :  { %v646_v19 = vsel %vm338_vm0, %v643_v16, %v645_v15  ;;  %v640_v21 = vrot.slane %v605_v17, 4  ;;  %v641_v22 = vrot.slane %v625_v18, 2 }
 0x28c   :  { %v652_v20 = vmul.f32 %v646_v19, %v990_v12 }
 0x28d   :  { %v648_v26 = vsel %vm644_vm11, %v640_v21, %v641_v22 }
 0x28e   :  { %654 = vst [vmem:[#allocation2] sm:$0xff] %v652_v20 }
 0x28f   :  { %v585_v23 = vpop.f32.mrf.mxu3  ;;  %v565_v25 = vpop.f32.mrf.mxu2 }
 0x290   :  { %v639_v24 = vrot.slane %v585_v23, 6 }
 0x292   :  { %v647_v27 = vsel %vm642_vm12, %v565_v25, %v639_v24 }
 0x293   :  { %v649_v28 = vsel %vm338_vm0, %v647_v27, %v648_v26 }
 0x294   :  { %v653_v12 = vmul.f32 %v649_v28, %v1062_v39 }
 0x296   :  { %655 = vst [vmem:[#allocation2 + $0x8] sm:$0xff] %v653_v12 }
 0x297   :  { %666 = dma.vmem_to_hbm [thread:$0]  %s662_s2, 256, %s664_s11, [#allocation3]  }
 0x298   :  { %726 = dma.done.wait [#allocation3], 256  }
 0x299   :  { %727 = vsyncadd [#allocation3], 4294967040 }
 0x29a   :  { %671 = vsyncpa [#allocation3], 1 }

</bundles_post_ra>
